<compile_context>
chip_gen: v6e
topology: v6e:2x2x1
jax: 0.10.0
libtpu: 0.0.40
codegen_flags: <defaults>
</compile_context>

<pallas_src>
import functools

import jax
import jax.numpy as jnp
from jax import lax
from jax.experimental import pallas as pl
from jax.experimental.pallas import tpu as pltpu

_NEG_INF = -2.3819763e38  # finite "-inf" (~ -0.7 * f32 max): keeps exp() NaN-free


def _round_up(x, m):
    return ((x + m - 1) // m) * m


def _tile_and_pad(size, target):
    """Return (tile, padded_size): single full-dim tile for small sizes, else pad."""
    if size <= target:
        return size, size
    return target, _round_up(size, target)


# --------------------------- tiled matmul kernel --------------------------- #

def _matmul_kernel(x_ref, w_ref, o_ref, acc_ref):
    @pl.when(pl.program_id(2) == 0)
    def _init():
        acc_ref[...] = jnp.zeros_like(acc_ref)

    acc_ref[...] += jnp.dot(x_ref[...], w_ref[...],
                            preferred_element_type=jnp.float32)

    @pl.when(pl.program_id(2) == pl.num_programs(2) - 1)
    def _finalize():
        o_ref[...] = acc_ref[...].astype(o_ref.dtype)


def linear_pallas(x2d, w, *, tm_target=512, tn_target=256, tk_target=512):
    """x2d: (M, K) bf16, w: (K, N) bf16 -> (M, N) bf16 with f32 accumulation."""
    M, K = x2d.shape
    K2, N = w.shape
    assert K == K2
    tm, Mp = _tile_and_pad(M, tm_target)
    tn, Np = _tile_and_pad(N, tn_target)
    tk, Kp = _tile_and_pad(K, tk_target)
    if (Mp, Kp) != (M, K):
        x2d = jnp.pad(x2d, ((0, Mp - M), (0, Kp - K)))
    if (Kp, Np) != (K, N):
        w = jnp.pad(w, ((0, Kp - K), (0, Np - N)))
    out = pl.pallas_call(
        _matmul_kernel,
        out_shape=jax.ShapeDtypeStruct((Mp, Np), x2d.dtype),
        grid=(Mp // tm, Np // tn, Kp // tk),
        in_specs=[
            pl.BlockSpec((tm, tk), lambda i, j, k: (i, k)),
            pl.BlockSpec((tk, tn), lambda i, j, k: (k, j)),
        ],
        out_specs=pl.BlockSpec((tm, tn), lambda i, j, k: (i, j)),
        scratch_shapes=[pltpu.VMEM((tm, tn), jnp.float32)],
        compiler_params=pltpu.CompilerParams(
            dimension_semantics=("parallel", "parallel", "arbitrary")),
    )(x2d, w)
    if (Mp, Np) != (M, N):
        out = out[:M, :N]
    return out


# ------------------------- flash attention kernel -------------------------- #

def _flash_kernel(q_ref, k_ref, v_ref, o_ref, m_sc, l_sc, acc_sc, *,
                  tq, tkv, sw, repeats, head_dim):
    qi = pl.program_id(2)
    ki = pl.program_id(3)
    q_start = qi * tq
    # First kv block of the band for this q tile (same formula as the index_map,
    # but un-clamped here); ki indexes within the band.
    first_blk = jnp.maximum(q_start - sw + 1, 0) // tkv
    kv_start = (first_blk + ki) * tkv

    @pl.when(ki == 0)
    def _init():
        m_sc[...] = jnp.full_like(m_sc, _NEG_INF)
        l_sc[...] = jnp.zeros_like(l_sc)
        acc_sc[...] = jnp.zeros_like(acc_sc)

    # Tiles left of the window never appear (first_blk); only the causal upper edge
    # needs checking. `interior` tiles lie fully inside the causal+window band.
    in_band = kv_start <= q_start + (tq - 1)
    interior = jnp.logical_and(kv_start + (tkv - 1) <= q_start,
                               kv_start > q_start + (tq - 1) - sw)

    def process(masked):
        k_t = k_ref[0]                                    # (tkv, D) bf16
        v_t = v_ref[0]                                    # (tkv, D) bf16
        if masked:
            # relative position (k - q): one iota difference + scalar offset,
            # built once and shared by every head of the GQA group.
            rel = (kv_start - q_start) + (
                lax.broadcasted_iota(jnp.int32, (tq, tkv), 1)
                - lax.broadcasted_iota(jnp.int32, (tq, tkv), 0))
            valid = jnp.logical_and(rel <= 0, rel > -sw)
        for h in range(repeats):                          # GQA group shares K/V tile
            qh = q_ref[0, :, h * head_dim:(h + 1) * head_dim]   # (tq, D), pre-scaled
            # NT contraction: no k transpose materialized.
            s = lax.dot_general(qh, k_t, (((1,), (1,)), ((), ())),
                                preferred_element_type=jnp.float32)  # (tq, tkv) f32
            m_prev = m_sc[h]
            if masked:
                s = jnp.where(valid, s, _NEG_INF)
            m_new = jnp.maximum(m_prev, jnp.max(s, axis=-1, keepdims=True))
            p = jnp.exp(s - m_new)
            if masked:
                # explicit zeroing so fully-masked rows never accumulate garbage
                p = jnp.where(valid, p, 0.0)
            alpha = jnp.exp(m_prev - m_new)
            l_sc[h] = alpha * l_sc[h] + jnp.sum(p, axis=-1, keepdims=True)
            acc_sc[h] = alpha * acc_sc[h] + lax.dot_general(
                p.astype(v_t.dtype), v_t, (((1,), (0,)), ((), ())),
                preferred_element_type=jnp.float32)
            m_sc[h] = m_new

    @pl.when(jnp.logical_and(in_band, interior))
    def _fast():                       # unmasked fast path for interior tiles
        process(masked=False)

    @pl.when(jnp.logical_and(in_band, jnp.logical_not(interior)))
    def _boundary():                   # diagonal / window-edge tiles only
        process(masked=True)

    @pl.when(ki == pl.num_programs(3) - 1)
    def _finalize():
        for h in range(repeats):
            o_ref[0, :, h * head_dim:(h + 1) * head_dim] = (
                acc_sc[h] * pl.reciprocal(l_sc[h], approx=True)).astype(o_ref.dtype)


def flash_attention(q, k, qkv, *, n_heads, n_kv_heads, head_dim, sliding_window,
                    tq_target=256, tkv_target=256):
    """Sliding-window causal flash attention (prefill).

    q:   (B, S, H*D)     rotated queries, softmax scale pre-folded into the weight.
    k:   (B, S, Hkv*D)   rotated keys.
    qkv: (B, S, (H+2*Hkv)*D) fused projection output; V is read in place from its
         trailing Hkv*D columns via the BlockSpec index_map (no slice copy).
    Returns (B, S, H*D).
    """
    B, S, _ = q.shape
    H, Hkv, D = n_heads, n_kv_heads, head_dim
    assert H % Hkv == 0
    repeats = H // Hkv
    # Lane-dim BlockSpec constraint for per-head column blocks of the flat layout.
    assert D % 128 == 0, "head_dim must be a multiple of 128 (Mistral uses 128)"

    if S <= max(tq_target, tkv_target):
        tq = tkv = S_pad = S
    else:
        tq, tkv = tq_target, tkv_target
        step = max(tq, tkv)
        assert step % min(tq, tkv) == 0
        S_pad = _round_up(S, step)
    if S_pad != S:
        pad = ((0, 0), (0, S_pad - S), (0, 0))
        q, k, qkv = jnp.pad(q, pad), jnp.pad(k, pad), jnp.pad(qkv, pad)

    num_q_blocks = S_pad // tq
    num_kv_blocks = S_pad // tkv
    sw = sliding_window
    # kv axis spans only the causal/sliding-window band of each q tile.
    nkv_band = min(num_kv_blocks, pl.cdiv(tq + sw - 1, tkv) + 1)

    def kv_block(qi, ki):
        first = jnp.maximum(qi * tq - sw + 1, 0) // tkv
        return jnp.minimum(first + ki, num_kv_blocks - 1)  # clamp: never OOB DMA

    kern = functools.partial(_flash_kernel, tq=tq, tkv=tkv, sw=sw,
                             repeats=repeats, head_dim=D)
    out = pl.pallas_call(
        kern,
        out_shape=jax.ShapeDtypeStruct((B, S_pad, H * D), q.dtype),
        grid=(B, Hkv, num_q_blocks, nkv_band),
        in_specs=[
            pl.BlockSpec((1, tq, repeats * D),
                         lambda b, hk, qi, ki: (b, qi, hk)),
            pl.BlockSpec((1, tkv, D),
                         lambda b, hk, qi, ki: (b, kv_block(qi, ki), hk)),
            pl.BlockSpec((1, tkv, D),
                         lambda b, hk, qi, ki: (b, kv_block(qi, ki), H + Hkv + hk)),
        ],
        out_specs=pl.BlockSpec((1, tq, repeats * D),
                               lambda b, hk, qi, ki: (b, qi, hk)),
        scratch_shapes=[
            pltpu.VMEM((repeats, tq, 1), jnp.float32),   # running max m
            pltpu.VMEM((repeats, tq, 1), jnp.float32),   # running denom l
            pltpu.VMEM((repeats, tq, D), jnp.float32),   # unnormalized output acc
        ],
        compiler_params=pltpu.CompilerParams(
            dimension_semantics=("parallel", "parallel", "parallel", "arbitrary")),
    )(q, k, qkv)
    if S_pad != S:
        out = out[:, :S, :]
    return out


# ------------------------------- JAX glue ---------------------------------- #

def apply_rotary_emb(x, cos, sin):
    """x: (B, S, Hn, D) with interleaved (real, imag) pairs; cos/sin: (S, D//2)."""
    # TODO(synk): could be fused into the flash kernel (q) / QKV epilogue (k) to
    # save the extra elementwise HBM pass; kept as XLA-fused glue for simplicity.
    b, s, h, d = x.shape
    xf = x.astype(jnp.float32).reshape(b, s, h, d // 2, 2)
    xr, xi = xf[..., 0], xf[..., 1]
    c = cos[None, :, None, :]
    si = sin[None, :, None, :]
    out = jnp.stack([xr * c - xi * si, xr * si + xi * c], axis=-1)
    return out.reshape(b, s, h, d).astype(x.dtype)


def attention_forward(params, x, cos, sin, positions, cfg):
    bsz, seqlen, dim = x.shape
    H, Hkv, hd = cfg["n_heads"], cfg["n_kv_heads"], cfg["head_dim"]
    sw = cfg["sliding_window"]

    # Fused QKV projection (softmax scale already folded into the wq columns).
    x2d = x.reshape(bsz * seqlen, dim)
    qkv = linear_pallas(x2d, params["wqkv_t"])
    qkv3 = qkv.reshape(bsz, seqlen, (H + 2 * Hkv) * hd)

    q_end, k_end = H * hd, (H + Hkv) * hd
    xq = qkv3[..., :q_end].reshape(bsz, seqlen, H, hd)
    xk = qkv3[..., q_end:k_end].reshape(bsz, seqlen, Hkv, hd)
    xq = apply_rotary_emb(xq, cos, sin)
    xk = apply_rotary_emb(xk, cos, sin)

    # Rolling KV-cache scatter (module side effect; prefill output ignores it).
    xv = qkv3[..., k_end:].reshape(bsz, seqlen, Hkv, hd)
    scatter_pos = positions[-sw:] % sw
    cache_k = params["cache_k"].at[:bsz, scatter_pos].set(xk[:, -sw:])
    cache_v = params["cache_v"].at[:bsz, scatter_pos].set(xv[:, -sw:])
    # TODO(synk): decode path (positions.shape[0] == 1 attending over the rolling
    # cache up to cur_pos) is not implemented; this exercises the prefill branch.

    # Flash attention on flat (B, S, heads*D) layouts — no head-major transposes,
    # GQA sharing and V slicing done entirely by the BlockSpec index_maps.
    out = flash_attention(
        xq.reshape(bsz, seqlen, H * hd),
        xk.reshape(bsz, seqlen, Hkv * hd),
        qkv3,
        n_heads=H, n_kv_heads=Hkv, head_dim=hd, sliding_window=sw,
        tq_target=cfg.get("attn_tq", 256), tkv_target=cfg.get("attn_tkv", 256))

    out = linear_pallas(out.reshape(bsz * seqlen, H * hd), params["wo_t"])
    return out.reshape(bsz, seqlen, dim), cache_k, cache_v


def reference_forward(raw, x, cos, sin, cfg):
    """Pure-JAX float32 reference (same math as the PyTorch module, prefill)."""
    bsz, seqlen, dim = x.shape
    H, Hkv, hd = cfg["n_heads"], cfg["n_kv_heads"], cfg["head_dim"]
    sw = cfg["sliding_window"]
    scale = hd ** -0.5
    xf = x.reshape(bsz * seqlen, dim).astype(jnp.float32)
    xq = (xf @ raw["wq"].astype(jnp.float32).T).reshape(bsz, seqlen, H, hd)
    xk = (xf @ raw["wk"].astype(jnp.float32).T).reshape(bsz, seqlen, Hkv, hd)
    xv = (xf @ raw["wv"].astype(jnp.float32).T).reshape(bsz, seqlen, Hkv, hd)
    xq = apply_rotary_emb(xq, cos, sin)
    xk = apply_rotary_emb(xk, cos, sin)
    rep = H // Hkv
    key = jnp.repeat(xk, rep, axis=2).transpose(0, 2, 1, 3)
    val = jnp.repeat(xv, rep, axis=2).transpose(0, 2, 1, 3)
    qh = xq.transpose(0, 2, 1, 3)
    s = jnp.einsum("bhqd,bhkd->bhqk", qh, key) * scale
    i = jnp.arange(seqlen)[:, None]
    j = jnp.arange(seqlen)[None, :]
    mask = (j <= i) & (j > i - sw)
    s = jnp.where(mask[None, None], s, -jnp.inf)
    p = jax.nn.softmax(s, axis=-1)
    o = jnp.einsum("bhqk,bhkd->bhqd", p, val)
    o = o.transpose(0, 2, 1, 3).reshape(bsz * seqlen, H * hd)
    out = o @ raw["wo"].astype(jnp.float32).T
    return out.reshape(bsz, seqlen, dim)


# --------------------------------- main ------------------------------------ #

if __name__ == "__main__":
    cfg = dict(
        dim=64,
        n_heads=4,
        n_kv_heads=2,
        head_dim=128,          # Mistral head_dim; lane-aligned per-head blocks
        sliding_window=16,
        max_batch_size=2,
        # Small attention tiles so this test exercises multi-tile banding, the
        # interior fast path, boundary masking, GQA blocking and S-padding.
        attn_tq=8,
        attn_tkv=8,
    )
    bsz, seqlen = 2, 36
    dtype = jnp.bfloat16  # DEFAULT_FLOAT

    key = jax.random.PRNGKey(0)
    k0, k1, k2, k3, k4 = jax.random.split(key, 5)

    H, Hkv, hd, dim = cfg["n_heads"], cfg["n_kv_heads"], cfg["head_dim"], cfg["dim"]
    scale = hd ** -0.5

    # nn.Linear weights are (out_features, in_features). Pre-transpose / fuse once
    # at setup; fold the softmax scale into the wq columns (commutes with rotary).
    wq = (jax.random.normal(k0, (H * hd, dim)) * 0.02).astype(dtype)
    wk = (jax.random.normal(k1, (Hkv * hd, dim)) * 0.02).astype(dtype)
    wv = (jax.random.normal(k2, (Hkv * hd, dim)) * 0.02).astype(dtype)
    wo = (jax.random.normal(k3, (dim, H * hd)) * 0.02).astype(dtype)

    params = {
        "wqkv_t": jnp.concatenate(
            [(wq.T.astype(jnp.float32) * scale).astype(dtype), wk.T, wv.T], axis=1),
        "wo_t": wo.T,
        "cache_k": jnp.zeros(
            (cfg["max_batch_size"], cfg["sliding_window"], Hkv, hd), dtype),
        "cache_v": jnp.zeros(
            (cfg["max_batch_size"], cfg["sliding_window"], Hkv, hd), dtype),
    }

    x = jax.random.normal(k4, (bsz, seqlen, dim)).astype(dtype)
    positions = jnp.arange(seqlen, dtype=jnp.int32)

    # freqs_cis (cos/sin form), theta = 10000
    inv_freq = 1.0 / (10000.0 ** (jnp.arange(0, hd, 2, dtype=jnp.float32) / hd))
    angles = positions.astype(jnp.float32)[:, None] * inv_freq[None, :]
    cos, sin = jnp.cos(angles), jnp.sin(angles)

    out, cache_k, cache_v = attention_forward(params, x, cos, sin, positions, cfg)
    jax.block_until_ready(out)

    raw = dict(wq=wq, wk=wk, wv=wv, wo=wo)
    ref = reference_forward(raw, x, cos, sin, cfg)
    assert jnp.all(jnp.isfinite(out.astype(jnp.float32)))
    assert jnp.allclose(out.astype(jnp.float32), ref, atol=3e-2, rtol=3e-1), (
        "kernel output diverged from reference")

    print("KERNEL_OK")
</pallas_src>

<mosaic_0001>
module attributes {stable_mosaic.version = 11 : i64} {
  func.func @_matmul_kernel(%arg0: i32, %arg1: i32, %arg2: i32, %arg3: memref<72x64xbf16, #tpu.memory_space<vmem>>, %arg4: memref<64x256xbf16, #tpu.memory_space<vmem>>, %arg5: memref<72x256xbf16, #tpu.memory_space<vmem>>, %arg6: memref<72x256xf32, #tpu.memory_space<vmem>>) attributes {dimension_semantics = [#tpu.dimension_semantics<parallel>, #tpu.dimension_semantics<parallel>, #tpu.dimension_semantics<arbitrary>], iteration_bounds = array<i64: 1, 4, 1>, scalar_prefetch = 0 : i64, scratch_operands = 1 : i64, tpu.core_type = #tpu.core_type<tc>, window_params = [{transform_indices = @transform_0, window_bounds = array<i64: 72, 64>}, {transform_indices = @transform_1, window_bounds = array<i64: 64, 256>}, {transform_indices = @transform_2, window_bounds = array<i64: 72, 256>}]} {
    %c0_i32 = arith.constant 0 : i32
    %0 = arith.cmpi eq, %arg2, %c0_i32 : i32
    %1 = arith.extui %0 : i1 to i32
    %c0_i32_0 = arith.constant 0 : i32
    %2 = arith.cmpi ne, %1, %c0_i32_0 : i32
    scf.if %2 {
      %cst_10 = arith.constant 0.000000e+00 : f32
      %12 = vector.broadcast %cst_10 : f32 to vector<72x256xf32>
      %c0_11 = arith.constant 0 : index
      %c0_12 = arith.constant 0 : index
      %13 = vector.load %arg6[%c0_11, %c0_12] : memref<72x256xf32, #tpu.memory_space<vmem>>, vector<72x256xf32>
      tpu.vector_store %arg6[%c0_11, %c0_12], %12 {strides = array<i32>} : memref<72x256xf32, #tpu.memory_space<vmem>>, vector<72x256xf32>,
    } else {
    }
    %c0 = arith.constant 0 : index
    %c0_1 = arith.constant 0 : index
    %3 = vector.load %arg6[%c0, %c0_1] : memref<72x256xf32, #tpu.memory_space<vmem>>, vector<72x256xf32>
    %c0_2 = arith.constant 0 : index
    %c0_3 = arith.constant 0 : index
    %4 = vector.load %arg3[%c0_2, %c0_3] : memref<72x64xbf16, #tpu.memory_space<vmem>>, vector<72x64xbf16>
    %c0_4 = arith.constant 0 : index
    %c0_5 = arith.constant 0 : index
    %5 = vector.load %arg4[%c0_4, %c0_5] : memref<64x256xbf16, #tpu.memory_space<vmem>>, vector<64x256xbf16>
    %cst = arith.constant dense<0.000000e+00> : vector<72x256xf32>
    %6 = tpu.matmul %4, %5, %cst {dimension_numbers = #tpu.dot_dimension_numbers<[1], [0], [0], [1], [0, 0, 1, 1], [], []>} : vector<72x64xbf16>, vector<64x256xbf16>, vector<72x256xf32> -> vector<72x256xf32>
    %7 = arith.addf %3, %6 : vector<72x256xf32>
    %c0_6 = arith.constant 0 : index
    %c0_7 = arith.constant 0 : index
    %8 = vector.load %arg6[%c0_6, %c0_7] : memref<72x256xf32, #tpu.memory_space<vmem>>, vector<72x256xf32>
    tpu.vector_store %arg6[%c0_6, %c0_7], %7 {strides = array<i32>} : memref<72x256xf32, #tpu.memory_space<vmem>>, vector<72x256xf32>,
    %c0_i32_8 = arith.constant 0 : i32
    %9 = arith.cmpi eq, %arg2, %c0_i32_8 : i32
    %10 = arith.extui %9 : i1 to i32
    %c0_i32_9 = arith.constant 0 : i32
    %11 = arith.cmpi ne, %10, %c0_i32_9 : i32
    scf.if %11 {
      %c0_10 = arith.constant 0 : index
      %c0_11 = arith.constant 0 : index
      %12 = vector.load %arg6[%c0_10, %c0_11] : memref<72x256xf32, #tpu.memory_space<vmem>>, vector<72x256xf32>
      %13 = arith.truncf %12 : vector<72x256xf32> to vector<72x256xbf16>
      %c0_12 = arith.constant 0 : index
      %c0_13 = arith.constant 0 : index
      %14 = vector.load %arg5[%c0_12, %c0_13] : memref<72x256xbf16, #tpu.memory_space<vmem>>, vector<72x256xbf16>
      tpu.vector_store %arg5[%c0_12, %c0_13], %13 {strides = array<i32>} : memref<72x256xbf16, #tpu.memory_space<vmem>>, vector<72x256xbf16>,
    } else {
    }
    return
  }
  func.func @transform_0(%arg0: i32, %arg1: i32, %arg2: i32) -> (i32, i32) {
    %c0_i32 = arith.constant 0 : i32
    return %arg0, %arg2 : i32, i32
  }
  func.func @transform_1(%arg0: i32, %arg1: i32, %arg2: i32) -> (i32, i32) {
    %c0_i32 = arith.constant 0 : i32
    return %arg2, %arg1 : i32, i32
  }
  func.func @transform_2(%arg0: i32, %arg1: i32, %arg2: i32) -> (i32, i32) {
    %c0_i32 = arith.constant 0 : i32
    return %arg0, %arg1 : i32, i32
  }
}

</mosaic_0001>

<bundles_post_ra>
// kernel: tpu_custom_call.1
= control target key start
LH: loop header
LB: loop body
LE: loop exit
PB: predicated region body
PF: predicated region fallthrough
CT: control target
= control target key end

     0   :  { %7 = vsyncpa [#allocation4], 0  ;;  %s1141_s0 = inlined_call_operand.vmem [shape: bf16[72,64], index: 0, kind: input, shape index: {}]   ;;  %s1142_s1 = inlined_call_operand.hbm [shape: bf16[64,1024], index: 1, kind: input, shape index: {}]   ;;  %s1143_s2 = inlined_call_operand.hbm [shape: bf16[72,1024], index: 2, kind: output, shape index: {}]  }
   0x1   :  { %9 = vsyncpa [#allocation4 + $0x1], 0 }
   0x2   :  { %10 = vsyncpa [#allocation5], 0 }
   0x3   :  { %12 = vsyncpa [#allocation5 + $0x1], 0  ;;  %s971_s9 = smov 0   ;;  %s973_s10 = smov 0  }
   0x4   :  { %s975_s11 = smov 0   ;;  %s977_s12 = smov 0  }
   0x5   :  { %s979_s13 = smov 0   ;;  %s981_s14 = smov 0  }
   0x6 LB: > { %s690_s15 = sadd.s32 4294967295, %s945_s14   ;;  %s691_s16 = sadd.s32 4294967294, %s945_s14   ;;  %s945_s14 = sphi %s981_s14, %s18_s14   ;;  %s941_s13 = sphi %s979_s13, %s1153_s13   ;;  %s937_s12 = sphi %s977_s12, %s1152_s12   ;;  %s933_s11 = sphi %s975_s11, %s1151_s11   ;;  %s929_s10 = sphi %s973_s10, %s1150_s10   ;;  %s925_s9 = sphi %s971_s9, %s1149_s9  }
   0x7   : > { %s33_s17 = sadd.s32 1, %s941_s13  ;;  %s74_s18 = sadd.s32 1, %s933_s11 }
   0x8   : > { %p35_p0 = scmp.ge.s32.totalorder %s33_s17, 4  ;;  %p81_p1 = scmp.ne.s32.totalorder %s933_s11, %s929_s10 }
   0x9   : > { %p82_p2 = scmp.eq.s32.totalorder %s945_s14, 0  ;;  %p87_p3 = scmp.ne.s32.totalorder %s929_s10, %s925_s9 }
   0xa   : > { %s1155_s17 = smov (%p35_p0, %s33_s17), 0  ;;  %p88_p5 = scmp.eq.s32.totalorder %s690_s15, 0 }
   0xb   : > { %p1012_p4 = por %p82_p2, %p81_p1  ;;  %s70_s20 = ssub.s32 %s941_s13, %s1155_s17 }
   0xc   : > { %p113_p6 = scmp.eq.s32.totalorder %s690_s15, 3  ;;  %p72_p7 = scmp.eq.s32.totalorder %s70_s20, 0 }
   0xd   : > { %p1018_p8 = por %p88_p5, %p87_p3  ;;  %p119_p10 = scmp.eq.s32.totalorder %s691_s16, 3 }
   0xe   : > { %p1022_p9 = por %p113_p6, %p81_p1  ;;  %p763_p12 = scmp.lt.s32.totalorder %s945_s14, 4 }
   0xf   : > { %s1027_s23 = scalar_select %p72_p7, %s933_s11, %s74_s18  }
  0x10   : > { %p1029_p11 = por %p119_p10, %p87_p3  ;;  %s151_s25 = sand.u32 1, %s933_s11  }
  0x11   : > { %s695_s26 = sshll.u32 %s151_s25, 6  ;;  %s731_s27 = sshll.u32 %s941_s13, 7 }
  0x12   : > { %s164_s30 = scalar_lea.hbm %s1142_s1, %s731_s27  ;;  %s155_s3 = scalar_lea.vmem [#allocation3], %s695_s26 }
  0x13   : > { %s165_s4 = sshll.u32 %s155_s3, 4  ;;  %p1041_p13 = pnand %p763_p12, %p1012_p4  ;;  %s166_s4 = int_to_ptr.vmem [resolvable:$true] %s165_s4 }
  0x14   : > { %s152_s6 = scalar_lea.sflag [#allocation4], %s151_s25  ;;  %s850_s7 = scalar_lea.vmem %s166_s4, 1024 }
  0x15   : > { %p839_p0 = pneg %p1041_p13  ;;  %p851_p1 = scmp.ne.s32.totalorder %s166_s4, %s850_s7 }
  0x16   : > { %s947_s8 = smov [#allocation3]  }
  0x17   : > { %p853_p2 = pnand %p851_p1, %p839_p0  ;;  %s855_s15 = sshll.u32 %s947_s8, 4  ;;  %s856_s15 = int_to_ptr.vmem [resolvable:$false] %s855_s15 }
  0x18   : > { %s857_s16 = scalar_lea.vmem %s856_s15, 2048  ;;  %p858_p5 = scmp.lt.s32.totalorder %s166_s4, %s856_s15 }
  0x19   : > { %p854_p3 = pneg %p853_p2  ;;  %p859_p6 = scmp.lt.s32.totalorder %s857_s16, %s850_s7 }
  0x1b   : > { %p860_p7 = por %p859_p6, %p858_p5 }
  0x1d   : > { %p861_p10 = pnand %p860_p7, %p854_p3 }
  0x1f   : > { %864 = shalt.err (!%p861_p10)
}
  0x20   : > { %s948_s18 = smov 512   ;;  %s949_s19 = smov 128  }
  0x21   : > { %s950_s20 = smov 8   ;;  %p698_p4 = scmp.ge.s32.totalorder %s945_s14, 1 }
  0x22   : > { %758 = dma.hbm_to_vmem [thread:$0]  (!%p1041_p13), %s164_s30, 1024, %s166_s4, %s152_s6, %s948_s18, %s949_s19, %s950_s20  }
  0x23   : > { %p173_p12 = scmp.lt.s32.totalorder %s945_s14, 5 }
  0x25   : > { %p174_p0 = pnand %p698_p4, %p173_p12 }
  0x26   : > { %s1052_s25 = sand.u32 (!%p174_p0), 1, %s929_s10  }
  0x27   : > { %177 = sbr.rel (%p174_p0) target bundleno = 295 (0x127), region = 28  ;;  %s699_s26 = sshll.u32 (!%p174_p0), %s1052_s25, 6 }
  0x28   : > { %s180_s27 = scalar_lea.sflag (!%p174_p0), [#allocation4], %s1052_s25  ;;  %s183_s28 = scalar_lea.vmem (!%p174_p0), [#allocation3], %s699_s26 }
  0x2c   : > { %916 = dma.done.wait (%p1018_p8), %s180_s27, 1024  }
  0x2d   : > { %918 = vsyncadd (%p1018_p8), %s180_s27, 4294966272  ;;  %v951_v0 = vmov 0   ;;  %v820_v1 = vld [vmem:[%s183_s28 + $0x34] ss:$8 sps:$4 sm:$0xff]   ;;  %v822_v2 = vld [vmem:[%s183_s28 + $0x30] ss:$8 sps:$4 sm:$0xff]  }
  0x2e   : > { %394 = vmatprep.mubr.bf16.mxu0 %v951_v0  ;;  %424 = vmatprep.mubr.bf16.mxu1 %v951_v0  ;;  %v823_v3 = vld [vmem:[%s183_s28 + $0x24] ss:$8 sps:$4 sm:$0xff]   ;;  %v825_v4 = vld [vmem:[%s183_s28 + $0x20] ss:$8 sps:$4 sm:$0xff]   ;;  %v826_v5 = vld [vmem:[%s183_s28 + $0x14] ss:$8 sps:$4 sm:$0xff]  }
  0x2f   : > { %370 = vmatprep.subr.bf16.mxu0 %v820_v1  ;;  %742 = vmatprep.subr.bf16.mxu1 %v820_v1  ;;  %v828_v6 = vld [vmem:[%s183_s28 + $0x10] ss:$8 sps:$4 sm:$0xff]   ;;  %v829_v7 = vld [vmem:[%s183_s28 + $0x4] ss:$8 sps:$4 sm:$0xff]   ;;  %v831_v8 = vld [vmem:[%s183_s28] ss:$8 sps:$4 sm:$0xff]  }
  0x30   : > { %371 = vmatpush1.bf16.msra.mxu0 %v822_v2  ;;  %746 = vmatpush1.bf16.msra.mxu1 %v822_v2  ;;  %v832_v9 = vld [vmem:[%s1141_s0] sm:$0xff]   ;;  %v833_v10 = vld [vmem:[%s1141_s0 + $0x18] sm:$0xff]   ;;  %vm346_vm0 = vcmask 523264   ;;  %v834_v11 = vld [vmem:[%s1141_s0 + $0x8] sm:$0xff]   ;;  %s750_s16 = smul.u32 72, %s1052_s25  ;;  %s741_s20 = sshll.u32 %s937_s12, 7 }
  0x31   : > { %372 = vmatprep.subr.bf16.mxu0 %v823_v3  ;;  %743 = vmatprep.subr.bf16.mxu1 %v823_v3  ;;  %v835_v12 = vld [vmem:[%s1141_s0 + $0x20] ss:$0 sps:$4 sm:$0xff]   ;;  %v836_v13 = vld [vmem:[%s1141_s0 + $0x10] sm:$0xff]   ;;  %s1093_s28 = scalar_lea.hbm %s1143_s2, %s741_s20  ;;  %s566_s21 = scalar_lea.sflag [#allocation5], %s1052_s25 }
  0x32   : > { %s1076_s18 = scalar_lea.vmem [#allocation6], %s750_s16  ;;  %s952_s12 = smov [#allocation6]  }
  0x33   : > { %s582_s19 = sshll.u32 %s1076_s18, 4  ;;  %s869_s30 = sshll.u32 %s952_s12, 4  ;;  %s1087_s19 = int_to_ptr.vmem [resolvable:$true] %s582_s19  ;;  %s870_s30 = int_to_ptr.vmem [resolvable:$false] %s869_s30 }
  0x34   : > { %373 = vmatpush1.bf16.msra.mxu0 %v825_v4  ;;  %747 = vmatpush1.bf16.msra.mxu1 %v825_v4  ;;  %s865_s29 = scalar_lea.vmem %s1087_s19, 1152  ;;  %s871_s3 = scalar_lea.vmem %s870_s30, 2304 }
  0x35   : > { %374 = vmatprep.subr.bf16.mxu0 %v826_v5  ;;  %744 = vmatprep.subr.bf16.mxu1 %v826_v5  ;;  %p866_p8 = scmp.ne.s32.totalorder %s1087_s19, %s865_s29  ;;  %p872_p2 = scmp.lt.s32.totalorder %s1087_s19, %s870_s30 }
  0x36   : > { %p873_p3 = scmp.lt.s32.totalorder %s871_s3, %s865_s29 }
  0x37   : > { %p867_p13 = pnand %p866_p8, %p1022_p9 }
  0x38   : > { %375 = vmatpush1.bf16.msra.mxu0 %v828_v6  ;;  %748 = vmatpush1.bf16.msra.mxu1 %v828_v6  ;;  %p874_p5 = por %p873_p3, %p872_p2 }
  0x39   : > { %376 = vmatprep.subr.bf16.mxu0 %v829_v7  ;;  %745 = vmatprep.subr.bf16.mxu1 %v829_v7  ;;  %p868_p1 = pneg %p867_p13 }
  0x3b   : > { %p875_p6 = pnand %p874_p5, %p868_p1 }
  0x3c   : > { %377 = vmatpush1.bf16.msra.mxu0 %v831_v8  ;;  %749 = vmatpush1.bf16.msra.mxu1 %v831_v8 }
  0x3f   : > { %713 = vmatmul.mubr.msk.bf16.vlgmr.msra.gmra.mxu0 %vm346_vm0, %v832_v9  ;;  %716 = vmatmul.mubr.msk.bf16.vlgmr.msra.gmra.mxu1 %vm346_vm0, %v833_v10 }
  0x40   : > { %404 = vmatprep.mubr.bf16.mxu0 %v951_v0  ;;  %434 = vmatprep.mubr.bf16.mxu1 %v951_v0 }
  0x47   : > { %714 = vmatmul.mubr.msk.bf16.gmra.mxu0 %vm346_vm0, %v834_v11  ;;  %717 = vmatmul.mubr.msk.bf16.gmra.mxu1 %vm346_vm0, %v835_v12 }
  0x48   : > { %414 = vmatprep.mubr.bf16.mxu0 %v951_v0 }
  0x4f   : > { %715 = vmatmul.mubr.msk.bf16.gmra.mxu0 %vm346_vm0, %v836_v13 }
  0xff   : > { %v396_v14 = vpop.f32.mrf.mxu0  ;;  %v426_v15 = vpop.f32.mrf.mxu1 }
 0x101   : > { %v398_v16 = vpop.f32.mrf.mxu0  ;;  %v428_v17 = vpop.f32.mrf.mxu1 }
 0x102   : > { %v732_v18 = vpack.c.bf16 %v398_v16, %v396_v14  ;;  %v738_v19 = vpack.c.bf16 %v428_v17, %v426_v15 }
 0x103   : > { %v400_v20 = vpop.f32.mrf.mxu0  ;;  %v430_v21 = vpop.f32.mrf.mxu1 }
 0x104   : > { %556 = vst [vmem:[%s1076_s18] sm:$0xff] %v732_v18  ;;  %562 = vst [vmem:[%s1076_s18 + $0x30] sm:$0xff] %v738_v19 }
 0x105   : > { %v402_v22 = vpop.f32.mrf.mxu0  ;;  %v432_v23 = vpop.f32.mrf.mxu1 }
 0x106   : > { %v733_v24 = vpack.c.bf16 %v402_v22, %v400_v20  ;;  %v739_v25 = vpack.c.bf16 %v432_v23, %v430_v21 }
 0x107   : > { %v406_v26 = vpop.f32.mrf.mxu0  ;;  %v436_v27 = vpop.f32.mrf.mxu1 }
 0x108   : > { %557 = vst [vmem:[%s1076_s18 + $0x8] sm:$0xff] %v733_v24  ;;  %563 = vst [vmem:[%s1076_s18 + $0x38] sm:$0xff] %v739_v25 }
 0x109   : > { %v408_v28 = vpop.f32.mrf.mxu0  ;;  %v438_v29 = vpop.f32.mrf.mxu1 }
 0x10a   : > { %v734_v30 = vpack.c.bf16 %v408_v28, %v406_v26  ;;  %v740_v31 = vpack.c.bf16 %v438_v29, %v436_v27 }
 0x10b   : > { %v410_v32 = vpop.f32.mrf.mxu0  ;;  %v440_v33 = vpop.f32.mrf.mxu1 }
 0x10c   : > { %558 = vst [vmem:[%s1076_s18 + $0x10] sm:$0xff] %v734_v30  ;;  %564 = vst [vmem:[%s1076_s18 + $0x40] sm:$0xff] %v740_v31 }
 0x10d   : > { %v412_v34 = vpop.f32.mrf.mxu0  ;;  %v441_v35 = vpop.f32.mrf.mxu1 }
 0x10e   : > { %v735_v36 = vpack.c.bf16 %v412_v34, %v410_v32 }
 0x10f   : > { %v416_v37 = vpop.f32.mrf.mxu0 }
 0x110   : > { %559 = vst [vmem:[%s1076_s18 + $0x18] sm:$0xff] %v735_v36 }
 0x111   : > { %v418_v38 = vpop.f32.mrf.mxu0 }
 0x112   : > { %v736_v39 = vpack.c.bf16 %v418_v38, %v416_v37 }
 0x113   : > { %v420_v40 = vpop.f32.mrf.mxu0 }
 0x114   : > { %560 = vst [vmem:[%s1076_s18 + $0x20] sm:$0xff] %v736_v39 }
 0x115   : > { %v422_v41 = vpop.f32.mrf.mxu0 }
 0x116   : > { %v737_v42 = vpack.c.bf16 %v422_v41, %v420_v40 }
 0x118   : > { %561 = vst [vmem:[%s1076_s18 + $0x28] sm:$0xff] %v737_v42 }
 0x119   : > { %878 = shalt.err (!%p875_p6)
}
 0x11a   : > { %s879_s4 = scalar_lea.hbm %s1093_s28, 1152  ;;  %s883_s7 = scalar_lea.hbm %s1143_s2, 4608 }
 0x11b   : > { %p880_p7 = scmp.ne.s32.totalorder %s1093_s28, %s879_s4  ;;  %p884_p12 = scmp.lt.s32.totalorder %s1093_s28, %s1143_s2 }
 0x11c   : > { %p885_p0 = scmp.lt.s32.totalorder %s883_s7, %s879_s4 }
 0x11d   : > { %p881_p10 = pnand %p880_p7, %p1022_p9 }
 0x11e   : > { %p886_p8 = por %p885_p0, %p884_p12 }
 0x11f   : > { %p882_p4 = pneg %p881_p10 }
 0x121   : > { %p887_p13 = pnand %p886_p8, %p882_p4 }
 0x123   : > { %890 = shalt.err (!%p887_p13)
}
 0x124   : > { %s953_s16 = smov 128   ;;  %s954_s18 = smov 512  }
 0x125   : > { %s955_s20 = smov 8  }
 0x126   : > { %753 = dma.vmem_to_hbm [thread:$0]  (%p1022_p9), %s1087_s19, 1152, %s1093_s28, %s566_s21, %s953_s16, %s954_s18, %s955_s20  }
 0x127 PF: > { %p764_p1 = scmp.ge.s32.totalorder %s945_s14, 2  ;;  %s597_s26 = sand.u32 1, %s925_s9  }
 0x128   : > { %s598_s27 = scalar_lea.sflag [#allocation5], %s597_s26 }
 0x129   : > { %p760_p2 = pnand %p764_p1, %p1029_p11 }
 0x12b   : > { %p761_p3 = pneg %p760_p2 }
 0x12d   : > { %920 = dma.done.wait (%p761_p3), %s598_s27, 1152  }
 0x12e   : > { %922 = vsyncadd (%p761_p3), %s598_s27, 4294966144  ;;  %s18_s14 = sadd.s32 1, %s945_s14   ;;  %s1149_s9 = smov %s929_s10 }
 0x12f   : > { %p15_p5 = scmp.ge.s32.totalorder %s18_s14, 6   ;;  %s1150_s10 = smov %s933_s11 }
 0x130   : > { %s1151_s11 = smov %s1027_s23  ;;  %s1152_s12 = smov %s941_s13 }
 0x131   : > { %s1153_s13 = smov %s1155_s17  ;;  %17 = sbr.rel (!%p15_p5) target bundleno = 6 (0x6), region = 84 }
 0x136   :  { %603 = vsyncpa [#allocation4], 1 }
 0x137   :  { %605 = vsyncpa [#allocation4 + $0x1], 1 }
 0x138   :  { %606 = vsyncpa [#allocation5], 1 }
 0x139   :  { %608 = vsyncpa [#allocation5 + $0x1], 1 }

</bundles_post_ra>
